<compile_context>
chip_gen: v7x
topology: tpu7x:2x2x1
jax: 0.10.0
libtpu: 0.0.40
codegen_flags: <defaults>
</compile_context>

<pallas_src>
import functools
from collections import namedtuple

import jax
import jax.numpy as jnp
from jax.experimental import pallas as pl
from jax.experimental.pallas import tpu as pltpu

VggOutputs = namedtuple("VggOutputs", ["relu1", "relu2", "relu3", "relu4"])

# VGG16 features[:23]: conv(cin,cout) entries, "M" = 2x2 max-pool (stride 2).
_VGG16_PLAN = [
    (3, 64), (64, 64), "M",
    (64, 128), (128, 128), "M",
    (128, 256), (256, 256), (256, 256), "M",
    (256, 512), (512, 512), (512, 512),
]
# capture activations after the 2nd, 4th, 7th, 10th conv+relu (torch layers 3, 8, 15, 22)
_CAPTURE_AFTER_CONV = {1, 3, 6, 9}

_COUT_TILE = 128  # safe for v5e; v6e/v7x could use 256


# ----------------------------------------------------------------------------
# Pallas kernels
# ----------------------------------------------------------------------------
def _conv3x3_relu_kernel(x_ref, w_ref, b_ref, o_ref, *, H, W):
    """Fused 3x3 conv (padding=1, stride=1) + bias + ReLU, one image x one Cout tile.

    x_ref: (1, (H+2)*W + 2, Cin) bf16   H-padded, flattened, +1 halo element each end
    w_ref: (9, Cin, TC)          bf16   taps in row-major (ky, kx) order
    b_ref: (1, TC)               f32
    o_ref: (1, HW, TC)           bf16
    """
    HW = H * W
    tc = o_ref.shape[-1]

    # Partial sums grouped by kx so the left/right border masks are applied once
    # per group (2 selects total) instead of once per tap (6 selects).
    acc_l = jnp.zeros((HW, tc), jnp.float32)   # kx == 0 taps
    acc_c = jnp.zeros((HW, tc), jnp.float32)   # kx == 1 taps
    acc_r = jnp.zeros((HW, tc), jnp.float32)   # kx == 2 taps
    for ky in range(3):
        # For tap (ky, kx) the needed inputs are a contiguous slice of the
        # H-padded, flattened image starting at ky*W + kx.
        xl = x_ref[0, pl.ds(ky * W + 0, HW), :]
        xc = x_ref[0, pl.ds(ky * W + 1, HW), :]
        xr = x_ref[0, pl.ds(ky * W + 2, HW), :]
        acc_l = acc_l + jnp.dot(xl, w_ref[3 * ky + 0], preferred_element_type=jnp.float32)
        acc_c = acc_c + jnp.dot(xc, w_ref[3 * ky + 1], preferred_element_type=jnp.float32)
        acc_r = acc_r + jnp.dot(xr, w_ref[3 * ky + 2], preferred_element_type=jnp.float32)

    # Output-column index of every flattened spatial position (border masking).
    col_iota = jax.lax.broadcasted_iota(jnp.int32, (HW, 1), 0)
    if W & (W - 1) == 0:
        col = col_iota & (W - 1)
    else:
        col = col_iota % W
    not_left = col != 0           # valid positions for kx == 0 taps
    not_right = col != (W - 1)    # valid positions for kx == 2 taps

    acc = acc_c
    acc = acc + jnp.where(not_left, acc_l, 0.0)
    acc = acc + jnp.where(not_right, acc_r, 0.0)
    acc = acc + b_ref[...]                                   # (1, TC) broadcast
    o_ref[0] = jnp.maximum(acc, 0.0).astype(o_ref.dtype)


def _matmul_bias_relu_kernel(x_ref, w_ref, b_ref, o_ref):
    """Im2col conv path (used for Cin=3): one (HW, K) @ (K, TC) matmul + bias + ReLU.

    x_ref: (1, HW, K) bf16, w_ref: (K, TC) bf16, b_ref: (1, TC) f32, o_ref: (1, HW, TC) bf16
    """
    acc = jnp.dot(x_ref[0], w_ref[...], preferred_element_type=jnp.float32)
    acc = acc + b_ref[...]
    o_ref[0] = jnp.maximum(acc, 0.0).astype(o_ref.dtype)


def _maxpool2x2_kernel(x_ref, o_ref):
    """2x2 / stride-2 max pool for one image.

    x_ref: (1, Ho, 2, Wo, 2*C)  -- wrapper reshaped (H, W, C) -> (Ho, 2, Wo, 2C)
    o_ref: (1, Ho, Wo, C)
    """
    c = o_ref.shape[-1]
    x = x_ref[0]                                       # (Ho, 2, Wo, 2C)
    a = jnp.maximum(x[:, 0], x[:, 1])                  # pool over the H pair
    o_ref[0] = jnp.maximum(a[:, :, :c], a[:, :, c:])   # pool over the W pair


# ----------------------------------------------------------------------------
# Wrappers (glue: padding / metadata reshapes / dtype casts only)
# ----------------------------------------------------------------------------
def conv3x3_relu(x, w, b):
    """x: (N, H, W, Cin), w: (3, 3, Cin, Cout), b: (Cout,) -> (N, H, W, Cout) bf16."""
    N, H, W, cin = x.shape
    cout = w.shape[-1]
    HW = H * W
    tc = min(_COUT_TILE, cout)
    num_t = cout // tc

    xb = x.astype(jnp.bfloat16)
    xp = jnp.pad(xb, ((0, 0), (1, 1), (0, 0), (0, 0)))        # zero-pad H only
    xf = xp.reshape(N, (H + 2) * W, cin)                       # flatten spatial
    xf = jnp.pad(xf, ((0, 0), (1, 1), (0, 0)))                 # halo for kx shift
    lin = (H + 2) * W + 2

    wf = w.astype(jnp.bfloat16).reshape(9, cin, cout)
    bf = b.astype(jnp.float32).reshape(1, cout)

    out = pl.pallas_call(
        functools.partial(_conv3x3_relu_kernel, H=H, W=W),
        out_shape=jax.ShapeDtypeStruct((N, HW, cout), jnp.bfloat16),
        grid=(N, num_t),                       # cout tile is the fast axis: the
        in_specs=[                             # input block is revisited (no re-DMA)
            pl.BlockSpec((1, lin, cin), lambda n, j: (n, 0, 0)),
            pl.BlockSpec((9, cin, tc), lambda n, j: (0, 0, j)),
            pl.BlockSpec((1, tc), lambda n, j: (0, j)),
        ],
        out_specs=pl.BlockSpec((1, HW, tc), lambda n, j: (n, 0, j)),
        compiler_params=pltpu.CompilerParams(
            dimension_semantics=("parallel", "arbitrary")),
    )(xf, wf, bf)
    return out.reshape(N, H, W, cout)


def conv3x3_relu_im2col(x, w, b):
    """First-layer path (tiny Cin): im2col in the wrapper, one K=9*Cin matmul."""
    N, H, W, cin = x.shape
    cout = w.shape[-1]
    HW = H * W
    K = 9 * cin
    tc = min(_COUT_TILE, cout)
    num_t = cout // tc

    xb = x.astype(jnp.bfloat16)
    xp = jnp.pad(xb, ((0, 0), (1, 1), (1, 1), (0, 0)))         # SAME padding H and W
    patches = jnp.concatenate(
        [xp[:, ky:ky + H, kx:kx + W, :] for ky in range(3) for kx in range(3)],
        axis=-1)                                               # (N, H, W, 9*Cin)
    pf = patches.reshape(N, HW, K)

    wf = w.astype(jnp.bfloat16).reshape(K, cout)               # matches (ky,kx,cin) order
    bf = b.astype(jnp.float32).reshape(1, cout)

    out = pl.pallas_call(
        _matmul_bias_relu_kernel,
        out_shape=jax.ShapeDtypeStruct((N, HW, cout), jnp.bfloat16),
        grid=(N, num_t),
        in_specs=[
            pl.BlockSpec((1, HW, K), lambda n, j: (n, 0, 0)),
            pl.BlockSpec((K, tc), lambda n, j: (0, j)),
            pl.BlockSpec((1, tc), lambda n, j: (0, j)),
        ],
        out_specs=pl.BlockSpec((1, HW, tc), lambda n, j: (n, 0, j)),
        compiler_params=pltpu.CompilerParams(
            dimension_semantics=("parallel", "arbitrary")),
    )(pf, wf, bf)
    return out.reshape(N, H, W, cout)


def maxpool2x2(x):
    """x: (N, H, W, C) -> (N, H//2, W//2, C), 2x2 max pool, stride 2."""
    N, H, W, C = x.shape
    Ho, Wo = H // 2, W // 2
    xr = x.reshape(N, Ho, 2, Wo, 2 * C)                        # metadata reshape
    return pl.pallas_call(
        _maxpool2x2_kernel,
        out_shape=jax.ShapeDtypeStruct((N, Ho, Wo, C), x.dtype),
        grid=(N,),
        in_specs=[pl.BlockSpec((1, Ho, 2, Wo, 2 * C), lambda n: (n, 0, 0, 0, 0))],
        out_specs=pl.BlockSpec((1, Ho, Wo, C), lambda n: (n, 0, 0, 0)),
        compiler_params=pltpu.CompilerParams(dimension_semantics=("parallel",)),
    )(xr)


# ----------------------------------------------------------------------------
# FeatureNet
# ----------------------------------------------------------------------------
def init_params(key):
    params = []
    conv_cfg = [e for e in _VGG16_PLAN if e != "M"]
    for i, (cin, cout) in enumerate(conv_cfg):
        kw, kb = jax.random.split(jax.random.fold_in(key, i))
        std = (2.0 / (9 * cin)) ** 0.5
        w = std * jax.random.normal(kw, (3, 3, cin, cout), jnp.float32)   # HWIO
        b = 0.01 * jax.random.normal(kb, (cout,), jnp.float32)
        params.append((w, b))
    return params


def feature_net(x_nchw, params):
    """Pallas implementation of FeatureNet.forward. Input/outputs are NCHW f32."""
    x = jnp.transpose(x_nchw, (0, 2, 3, 1))                    # NCHW -> NHWC
    results = []
    conv_i = 0
    for op in _VGG16_PLAN:
        if op == "M":
            x = maxpool2x2(x)
        else:
            w, b = params[conv_i]
            if w.shape[2] <= 8:                                # Cin=3 first layer
                x = conv3x3_relu_im2col(x, w, b)
            else:
                x = conv3x3_relu(x, w, b)
            if conv_i in _CAPTURE_AFTER_CONV:
                results.append(jnp.transpose(x, (0, 3, 1, 2)).astype(jnp.float32))
            conv_i += 1
    return VggOutputs(*results)


# ----------------------------------------------------------------------------
# Pure-JAX reference (mirrors the kernels' bf16 activations / f32 accumulation)
# ----------------------------------------------------------------------------
def _ref_feature_net(x_nchw, params):
    x = jnp.transpose(x_nchw, (0, 2, 3, 1)).astype(jnp.bfloat16)
    results = []
    conv_i = 0
    for op in _VGG16_PLAN:
        if op == "M":
            N, H, W, C = x.shape
            x = x.reshape(N, H // 2, 2, W // 2, 2, C).max(axis=(2, 4))
        else:
            w, b = params[conv_i]
            y = jax.lax.conv_general_dilated(
                x, w.astype(jnp.bfloat16), window_strides=(1, 1), padding="SAME",
                dimension_numbers=("NHWC", "HWIO", "NHWC"),
                preferred_element_type=jnp.float32)
            x = jnp.maximum(y + b, 0.0).astype(jnp.bfloat16)
            if conv_i in _CAPTURE_AFTER_CONV:
                results.append(jnp.transpose(x, (0, 3, 1, 2)).astype(jnp.float32))
            conv_i += 1
    return VggOutputs(*results)


if __name__ == "__main__":
    key = jax.random.PRNGKey(0)
    params = init_params(key)
    x = jax.random.normal(jax.random.fold_in(key, 123), (2, 3, 16, 16), jnp.float32)

    outs = feature_net(x, params)
    outs = jax.block_until_ready(outs)

    expected_shapes = {
        "relu1": (2, 64, 16, 16),
        "relu2": (2, 128, 8, 8),
        "relu3": (2, 256, 4, 4),
        "relu4": (2, 512, 2, 2),
    }
    refs = _ref_feature_net(x, params)
    for name, got, want in zip(VggOutputs._fields, outs, refs):
        assert got.shape == expected_shapes[name], (name, got.shape)
        err = float(jnp.max(jnp.abs(got - want)))
        scale = float(jnp.max(jnp.abs(want))) + 1e-6
        assert err <= 1e-2 * scale, f"{name}: max abs err {err} vs scale {scale}"

    print("KERNEL_OK")
</pallas_src>

<mosaic_0001>
module attributes {stable_mosaic.version = 11 : i64} {
  func.func @_matmul_bias_relu_kernel(%arg0: i32, %arg1: i32, %arg2: memref<1x256x27xbf16, #tpu.memory_space<vmem>>, %arg3: memref<27x64xbf16, #tpu.memory_space<vmem>>, %arg4: memref<1x64xf32, #tpu.memory_space<vmem>>, %arg5: memref<1x256x64xbf16, #tpu.memory_space<vmem>>) attributes {dimension_semantics = [#tpu.dimension_semantics<parallel>, #tpu.dimension_semantics<arbitrary>], iteration_bounds = array<i64: 2, 1>, scalar_prefetch = 0 : i64, scratch_operands = 0 : i64, tpu.core_type = #tpu.core_type<tc>, window_params = [{transform_indices = @transform_0, window_bounds = array<i64: 1, 256, 27>}, {transform_indices = @transform_1, window_bounds = array<i64: 27, 64>}, {transform_indices = @transform_2, window_bounds = array<i64: 1, 64>}, {transform_indices = @transform_3, window_bounds = array<i64: 1, 256, 64>}]} {
    %c0 = arith.constant 0 : index
    %c0_0 = arith.constant 0 : index
    %c0_1 = arith.constant 0 : index
    %0 = vector.load %arg2[%c0, %c0_0, %c0_1] : memref<1x256x27xbf16, #tpu.memory_space<vmem>>, vector<1x256x27xbf16>
    %1 = vector.shape_cast %0 : vector<1x256x27xbf16> to vector<256x27xbf16>
    %c0_2 = arith.constant 0 : index
    %c0_3 = arith.constant 0 : index
    %2 = vector.load %arg3[%c0_2, %c0_3] : memref<27x64xbf16, #tpu.memory_space<vmem>>, vector<27x64xbf16>
    %cst = arith.constant dense<0.000000e+00> : vector<256x64xf32>
    %3 = tpu.matmul %1, %2, %cst {dimension_numbers = #tpu.dot_dimension_numbers<[1], [0], [0], [1], [0, 0, 1, 1], [], []>} : vector<256x27xbf16>, vector<27x64xbf16>, vector<256x64xf32> -> vector<256x64xf32>
    %c0_4 = arith.constant 0 : index
    %c0_5 = arith.constant 0 : index
    %4 = vector.load %arg4[%c0_4, %c0_5] : memref<1x64xf32, #tpu.memory_space<vmem>>, vector<1x64xf32>
    %5 = vector.broadcast %4 : vector<1x64xf32> to vector<256x64xf32>
    %6 = arith.addf %3, %5 : vector<256x64xf32>
    %cst_6 = arith.constant 0.000000e+00 : f32
    %7 = vector.broadcast %cst_6 : f32 to vector<256x64xf32>
    %8 = arith.maximumf %6, %7 : vector<256x64xf32>
    %9 = arith.truncf %8 : vector<256x64xf32> to vector<256x64xbf16>
    %c0_7 = arith.constant 0 : index
    %c0_8 = arith.constant 0 : index
    %c0_9 = arith.constant 0 : index
    %10 = vector.load %arg5[%c0_7, %c0_8, %c0_9] : memref<1x256x64xbf16, #tpu.memory_space<vmem>>, vector<1x256x64xbf16>
    %11 = vector.shape_cast %10 : vector<1x256x64xbf16> to vector<256x64xbf16>
    %12 = vector.shape_cast %9 : vector<256x64xbf16> to vector<1x256x64xbf16>
    tpu.vector_store %arg5[%c0_7, %c0_8, %c0_9], %12 {strides = array<i32>} : memref<1x256x64xbf16, #tpu.memory_space<vmem>>, vector<1x256x64xbf16>,
    return
  }
  func.func @transform_0(%arg0: i32, %arg1: i32) -> (i32, i32, i32) {
    %c0_i32 = arith.constant 0 : i32
    %c0_i32_0 = arith.constant 0 : i32
    %c0_i32_1 = arith.constant 0 : i32
    return %arg0, %c0_i32, %c0_i32_0 : i32, i32, i32
  }
  func.func @transform_1(%arg0: i32, %arg1: i32) -> (i32, i32) {
    %c0_i32 = arith.constant 0 : i32
    %c0_i32_0 = arith.constant 0 : i32
    return %c0_i32, %arg1 : i32, i32
  }
  func.func @transform_2(%arg0: i32, %arg1: i32) -> (i32, i32) {
    %c0_i32 = arith.constant 0 : i32
    %c0_i32_0 = arith.constant 0 : i32
    return %c0_i32, %arg1 : i32, i32
  }
  func.func @transform_3(%arg0: i32, %arg1: i32) -> (i32, i32, i32) {
    %c0_i32 = arith.constant 0 : i32
    %c0_i32_0 = arith.constant 0 : i32
    return %arg0, %c0_i32, %arg1 : i32, i32, i32
  }
}

</mosaic_0001>

<bundles_post_ra>
// kernel: tpu_custom_call.1
= control target key start
LH: loop header
LB: loop body
LE: loop exit
PB: predicated region body
PF: predicated region fallthrough
CT: control target
= control target key end

     0   :  { %s1132_s12 = smov 0   ;;  %s1134_s13 = smov 0   ;;  %s1315_s0 = inlined_call_operand.vmem [shape: bf16[2,256,27], index: 0, kind: input, shape index: {}]   ;;  %s1316_s1 = inlined_call_operand.vmem [shape: bf16[27,64], index: 1, kind: input, shape index: {}]   ;;  %s1317_s2 = inlined_call_operand.vmem [shape: f32[1,64], index: 2, kind: input, shape index: {}]   ;;  %s1318_s3 = inlined_call_operand.vmem [shape: bf16[2,256,64], index: 3, kind: output, shape index: {}]  }
   0x1   :  { %s1136_s14 = smov 0  }
   0x2 LB: > { %s25_s15 = sadd.s32 1, %s1105_s13  ;;  %p878_p0 = scmp.ge.s32.totalorder %s1109_s14, 1  ;;  %s1109_s14 = sphi %s1136_s14, %s13_s14   ;;  %s1105_s13 = sphi %s1134_s13, %s1320_s13   ;;  %s1101_s12 = sphi %s1132_s12, %s1319_s12  }
   0x3   : > { %p27_p1 = scmp.ge.s32.totalorder %s25_s15, 2  ;;  %p168_p2 = scmp.lt.s32.totalorder %s1109_s14, 3 }
   0x5   : > { %s1322_s15 = smov (%p27_p1, %s25_s15), 0  ;;  %p169_p3 = pnand %p878_p0, %p168_p2 }
   0x6   : > { %v1069_v0 = vld [vmem:[%s1316_s1] sm:$0xff] (!%p169_p3)   ;;  %vm406_vm0 = vcmask (!%p169_p3), 1044480   ;;  %v1070_v1 = vld [vmem:[%s1316_s1 + $0x8] sm:$0x3f] (!%p169_p3)   ;;  %vm407_vm1 = vcmask (!%p169_p3), 1045504   ;;  %p202_p4 = scmp.lt.s32.totalorder (!%p169_p3), %s1101_s12, 1 }
   0x7   : > { %172 = sbr.rel (%p169_p3) target bundleno = 266 (0x10a), region = 32  ;;  %1004 = vmatprep.subr.bf16.mxu0 (!%p169_p3), %v1069_v0  ;;  %1040 = vmatprep.subr.bf16.mxu1 (!%p169_p3), %v1069_v0  ;;  %v1111_v2 = vmov (!%p169_p3), 65535   ;;  %vm357_vm2 = vcmask (!%p169_p3), 220160   ;;  %v1201_v22 = vld [vmem:[%s1317_s2] ss:$0 sm:$0xff] (!%p169_p3)  ;;  %vm734_vm3 = vcmask (!%p169_p3), 519168  }
   0x8   : > { %1005 = vmatpush3.bf16.msra.mxu0 (!%p169_p3), %v1069_v0  ;;  %1042 = vmatpush3.bf16.msra.mxu1 (!%p169_p3), %v1069_v0  ;;  %v408_v3 = vsel (!%p169_p3), %vm406_vm0, 4294967295, %v1111_v2 }
   0x9   : > { %v409_v4 = vsel (!%p169_p3), %vm407_vm1, %v408_v3, 0 }
   0xa   : > { %v411_v5 = vand.u32 (!%p169_p3), %v1070_v1, %v409_v4 }
   0xc   : > { %1006 = vmatprep.subr.bf16.mxu0 (!%p169_p3), %v411_v5  ;;  %1041 = vmatprep.subr.bf16.mxu1 (!%p169_p3), %v411_v5 }
   0xd   : > { %1007 = vmatpush3.bf16.msra.mxu0 (!%p169_p3), %v411_v5  ;;  %1043 = vmatpush3.bf16.msra.mxu1 (!%p169_p3), %v411_v5 }
   0xe   : > { %s1324_s12 = smov (!%p202_p4, %s1101_s12), 1 }
   0xf   : > { %s952_s20 = sshll.u32 %s1324_s12, 7 }
  0x10   : > { %s1164_s23 = scalar_lea.vmem %s1315_s0, %s952_s20  ;;  %s1213_s28 = scalar_lea.vmem %s1318_s3, %s952_s20 }
  0x11   : > { %v1071_v6 = vld [vmem:[%s1164_s23] sm:$0xff]   ;;  %v1073_v8 = vld [vmem:[%s1164_s23 + $0x8] sm:$0xff]   ;;  %v1075_v10 = vld [vmem:[%s1164_s23 + $0x10] sm:$0xff]  }
  0x12   : > { %v1072_v7 = vld [vmem:[%s1164_s23 + $0x40] sm:$0xff]   ;;  %1008 = vmatprep.mubr.msk.bf16.mxu0 %vm357_vm2, %v1071_v6  ;;  %v1074_v9 = vld [vmem:[%s1164_s23 + $0x48] sm:$0xff]   ;;  %v1076_v11 = vld [vmem:[%s1164_s23 + $0x50] sm:$0xff]  }
  0x13   : > { %1024 = vmatprep.mubr.msk.bf16.mxu1 %vm357_vm2, %v1072_v7  ;;  %1009 = vmatmul.mubr.msk.bf16.vlgmr.msra.gmra.mrb[0].mxu0 %vm357_vm2, %v1073_v8  ;;  %v1077_v12 = vld [vmem:[%s1164_s23 + $0x18] sm:$0xff]   ;;  %v1079_v14 = vld [vmem:[%s1164_s23 + $0x20] sm:$0xff]   ;;  %v1081_v16 = vld [vmem:[%s1164_s23 + $0x28] sm:$0xff]  }
  0x14   : > { %1025 = vmatmul.mubr.msk.bf16.vlgmr.msra.gmra.mrb[0].mxu1 %vm357_vm2, %v1074_v9  ;;  %1012 = vmatprep.mubr.msk.bf16.mxu0 %vm357_vm2, %v1075_v10  ;;  %v1078_v13 = vld [vmem:[%s1164_s23 + $0x58] sm:$0xff]   ;;  %v1080_v15 = vld [vmem:[%s1164_s23 + $0x60] sm:$0xff]   ;;  %v1082_v17 = vld [vmem:[%s1164_s23 + $0x68] sm:$0xff]  }
  0x15   : > { %1028 = vmatprep.mubr.msk.bf16.mxu1 %vm357_vm2, %v1076_v11  ;;  %v1083_v18 = vld [vmem:[%s1164_s23 + $0x30] sm:$0xff]   ;;  %v1085_v20 = vld [vmem:[%s1164_s23 + $0x38] sm:$0xff]  }
  0x16   : > { %v1084_v19 = vld [vmem:[%s1164_s23 + $0x70] sm:$0xff]   ;;  %v1086_v21 = vld [vmem:[%s1164_s23 + $0x78] sm:$0xff]  }
  0x1b   : > { %1013 = vmatmul.mubr.msk.bf16.gmra.mrb[4].mxu0 %vm357_vm2, %v1077_v12 }
  0x1c   : > { %1029 = vmatmul.mubr.msk.bf16.gmra.mrb[4].mxu1 %vm357_vm2, %v1078_v13  ;;  %1016 = vmatprep.mubr.msk.bf16.mxu0 %vm357_vm2, %v1079_v14 }
  0x1d   : > { %1032 = vmatprep.mubr.msk.bf16.mxu1 %vm357_vm2, %v1080_v15 }
  0x23   : > { %1017 = vmatmul.mubr.msk.bf16.gmra.mrb[8].mxu0 %vm357_vm2, %v1081_v16 }
  0x24   : > { %1033 = vmatmul.mubr.msk.bf16.gmra.mrb[8].mxu1 %vm357_vm2, %v1082_v17  ;;  %1020 = vmatprep.mubr.msk.bf16.mxu0 %vm357_vm2, %v1083_v18 }
  0x25   : > { %1036 = vmatprep.mubr.msk.bf16.mxu1 %vm357_vm2, %v1084_v19 }
  0x2b   : > { %1021 = vmatmul.mubr.msk.bf16.gmra.mrb[12].mxu0 %vm357_vm2, %v1085_v20 }
  0x2c   : > { %1037 = vmatmul.mubr.msk.bf16.gmra.mrb[12].mxu1 %vm357_vm2, %v1086_v21 }
  0xe6   : > { %v1010_v23 = vpop.f32.mrb[0].mxu0 }
  0xe7   : > { %v456_v24 = vadd.f32 %v1010_v23, %v1201_v22  ;;  %v1026_v25 = vpop.f32.mrb[0].mxu1  ;;  %v447_v26 = vpop.f32.mrb[1].mxu0 }
  0xe8   : > { %v520_v27 = vadd.f32 %v1026_v25, %v1201_v22  ;;  %v448_v28 = vadd.f32 %v1201_v22, %v447_v26  ;;  %v511_v29 = vpop.f32.mrb[1].mxu1  ;;  %v1011_v30 = vpop.f32.mrb[2].mxu0 }
  0xe9   : > { %v576_v31 = vmax.f32 %v456_v24, 0.0  ;;  %v512_v32 = vadd.f32 %v1201_v22, %v511_v29  ;;  %v459_v33 = vadd.f32 %v1011_v30, %v1201_v22  ;;  %v1027_v34 = vpop.f32.mrb[2].mxu1  ;;  %v450_v35 = vpop.f32.mrb[3].mxu0 }
  0xea   : > { %v592_v36 = vmax.f32 %v520_v27, 0.0  ;;  %v574_v37 = vmax.f32 %v448_v28, 0.0  ;;  %v523_v38 = vadd.f32 %v1027_v34, %v1201_v22  ;;  %v451_v39 = vadd.f32 %v1201_v22, %v450_v35  ;;  %v514_v40 = vpop.f32.mrb[3].mxu1 }
  0xeb   : > { %v956_v41 = vpack.c.bf16 %v576_v31, %v576_v31  ;;  %v590_v42 = vmax.f32 %v512_v32, 0.0  ;;  %v577_v43 = vmax.f32 %v459_v33, 0.0  ;;  %v515_v44 = vadd.f32 %v1201_v22, %v514_v40 }
  0xec   : > { %v972_v45 = vpack.c.bf16 %v592_v36, %v592_v36  ;;  %v954_v46 = vpack.c.bf16 %v574_v37, %v574_v37  ;;  %v593_v47 = vmax.f32 %v523_v38, 0.0  ;;  %v575_v48 = vmax.f32 %v451_v39, 0.0 }
  0xed   : > { %737 = vst.msk [vmem:[%s1213_s28 + $0x8] sm:$0xf] %vm734_vm3, %v956_v41  ;;  %v970_v49 = vpack.c.bf16 %v590_v42, %v590_v42  ;;  %v957_v50 = vpack.c.bf16 %v577_v43, %v577_v43  ;;  %v591_v51 = vmax.f32 %v515_v44, 0.0 }
  0xee   : > { %753 = vst.msk [vmem:[%s1213_s28 + $0x48] sm:$0xf] %vm734_vm3, %v972_v45  ;;  %735 = vst.msk [vmem:[%s1213_s28] sm:$0xf] %vm734_vm3, %v954_v46  ;;  %v973_v52 = vpack.c.bf16 %v593_v47, %v593_v47  ;;  %v955_v53 = vpack.c.bf16 %v575_v48, %v575_v48  ;;  %v1014_v54 = vpop.f32.mrb[4].mxu0 }
  0xef   : > { %751 = vst.msk [vmem:[%s1213_s28 + $0x40] sm:$0xf] %vm734_vm3, %v970_v49  ;;  %738 = vst.msk [vmem:[%s1213_s28 + $0xc] sm:$0xf] %vm734_vm3, %v957_v50  ;;  %v971_v55 = vpack.c.bf16 %v591_v51, %v591_v51  ;;  %v472_v56 = vadd.f32 %v1014_v54, %v1201_v22  ;;  %v1030_v57 = vpop.f32.mrb[4].mxu1  ;;  %v463_v58 = vpop.f32.mrb[5].mxu0 }
  0xf0   : > { %754 = vst.msk [vmem:[%s1213_s28 + $0x4c] sm:$0xf] %vm734_vm3, %v973_v52  ;;  %736 = vst.msk [vmem:[%s1213_s28 + $0x4] sm:$0xf] %vm734_vm3, %v955_v53  ;;  %v536_v59 = vadd.f32 %v1030_v57, %v1201_v22  ;;  %v464_v60 = vadd.f32 %v1201_v22, %v463_v58  ;;  %v527_v61 = vpop.f32.mrb[5].mxu1  ;;  %v1015_v62 = vpop.f32.mrb[6].mxu0 }
  0xf1   : > { %752 = vst.msk [vmem:[%s1213_s28 + $0x44] sm:$0xf] %vm734_vm3, %v971_v55  ;;  %v580_v63 = vmax.f32 %v472_v56, 0.0  ;;  %v528_v0 = vadd.f32 %v1201_v22, %v527_v61  ;;  %v475_v1 = vadd.f32 %v1015_v62, %v1201_v22  ;;  %v1031_v2 = vpop.f32.mrb[6].mxu1  ;;  %v466_v3 = vpop.f32.mrb[7].mxu0 }
  0xf2   : > { %v596_v4 = vmax.f32 %v536_v59, 0.0  ;;  %v578_v5 = vmax.f32 %v464_v60, 0.0  ;;  %v539_v6 = vadd.f32 %v1031_v2, %v1201_v22  ;;  %v467_v7 = vadd.f32 %v1201_v22, %v466_v3  ;;  %v530_v8 = vpop.f32.mrb[7].mxu1 }
  0xf3   : > { %v960_v9 = vpack.c.bf16 %v580_v63, %v580_v63  ;;  %v594_v10 = vmax.f32 %v528_v0, 0.0  ;;  %v581_v11 = vmax.f32 %v475_v1, 0.0  ;;  %v531_v12 = vadd.f32 %v1201_v22, %v530_v8 }
  0xf4   : > { %v976_v13 = vpack.c.bf16 %v596_v4, %v596_v4  ;;  %v958_v14 = vpack.c.bf16 %v578_v5, %v578_v5  ;;  %v597_v15 = vmax.f32 %v539_v6, 0.0  ;;  %v579_v16 = vmax.f32 %v467_v7, 0.0 }
  0xf5   : > { %741 = vst.msk [vmem:[%s1213_s28 + $0x18] sm:$0xf] %vm734_vm3, %v960_v9  ;;  %v974_v17 = vpack.c.bf16 %v594_v10, %v594_v10  ;;  %v961_v18 = vpack.c.bf16 %v581_v11, %v581_v11  ;;  %v595_v19 = vmax.f32 %v531_v12, 0.0 }
  0xf6   : > { %757 = vst.msk [vmem:[%s1213_s28 + $0x58] sm:$0xf] %vm734_vm3, %v976_v13  ;;  %739 = vst.msk [vmem:[%s1213_s28 + $0x10] sm:$0xf] %vm734_vm3, %v958_v14  ;;  %v977_v20 = vpack.c.bf16 %v597_v15, %v597_v15  ;;  %v959_v21 = vpack.c.bf16 %v579_v16, %v579_v16  ;;  %v1018_v23 = vpop.f32.mrb[8].mxu0 }
  0xf7   : > { %755 = vst.msk [vmem:[%s1213_s28 + $0x50] sm:$0xf] %vm734_vm3, %v974_v17  ;;  %742 = vst.msk [vmem:[%s1213_s28 + $0x1c] sm:$0xf] %vm734_vm3, %v961_v18  ;;  %v975_v24 = vpack.c.bf16 %v595_v19, %v595_v19  ;;  %v488_v25 = vadd.f32 %v1018_v23, %v1201_v22  ;;  %v1034_v26 = vpop.f32.mrb[8].mxu1  ;;  %v479_v27 = vpop.f32.mrb[9].mxu0 }
  0xf8   : > { %758 = vst.msk [vmem:[%s1213_s28 + $0x5c] sm:$0xf] %vm734_vm3, %v977_v20  ;;  %740 = vst.msk [vmem:[%s1213_s28 + $0x14] sm:$0xf] %vm734_vm3, %v959_v21  ;;  %v552_v28 = vadd.f32 %v1034_v26, %v1201_v22  ;;  %v480_v29 = vadd.f32 %v1201_v22, %v479_v27  ;;  %v543_v30 = vpop.f32.mrb[9].mxu1  ;;  %v1019_v31 = vpop.f32.mrb[10].mxu0 }
  0xf9   : > { %756 = vst.msk [vmem:[%s1213_s28 + $0x54] sm:$0xf] %vm734_vm3, %v975_v24  ;;  %v584_v32 = vmax.f32 %v488_v25, 0.0  ;;  %v544_v33 = vadd.f32 %v1201_v22, %v543_v30  ;;  %v491_v34 = vadd.f32 %v1019_v31, %v1201_v22  ;;  %v1035_v35 = vpop.f32.mrb[10].mxu1  ;;  %v482_v36 = vpop.f32.mrb[11].mxu0 }
  0xfa   : > { %v600_v37 = vmax.f32 %v552_v28, 0.0  ;;  %v582_v38 = vmax.f32 %v480_v29, 0.0  ;;  %v555_v39 = vadd.f32 %v1035_v35, %v1201_v22  ;;  %v483_v40 = vadd.f32 %v1201_v22, %v482_v36  ;;  %v546_v41 = vpop.f32.mrb[11].mxu1 }
  0xfb   : > { %v964_v42 = vpack.c.bf16 %v584_v32, %v584_v32  ;;  %v598_v43 = vmax.f32 %v544_v33, 0.0  ;;  %v585_v44 = vmax.f32 %v491_v34, 0.0  ;;  %v547_v45 = vadd.f32 %v1201_v22, %v546_v41 }
  0xfc   : > { %v980_v46 = vpack.c.bf16 %v600_v37, %v600_v37  ;;  %v962_v47 = vpack.c.bf16 %v582_v38, %v582_v38  ;;  %v601_v48 = vmax.f32 %v555_v39, 0.0  ;;  %v583_v49 = vmax.f32 %v483_v40, 0.0 }
  0xfd   : > { %745 = vst.msk [vmem:[%s1213_s28 + $0x28] sm:$0xf] %vm734_vm3, %v964_v42  ;;  %v978_v50 = vpack.c.bf16 %v598_v43, %v598_v43  ;;  %v965_v51 = vpack.c.bf16 %v585_v44, %v585_v44  ;;  %v599_v52 = vmax.f32 %v547_v45, 0.0 }
  0xfe   : > { %761 = vst.msk [vmem:[%s1213_s28 + $0x68] sm:$0xf] %vm734_vm3, %v980_v46  ;;  %743 = vst.msk [vmem:[%s1213_s28 + $0x20] sm:$0xf] %vm734_vm3, %v962_v47  ;;  %v981_v53 = vpack.c.bf16 %v601_v48, %v601_v48  ;;  %v963_v54 = vpack.c.bf16 %v583_v49, %v583_v49  ;;  %v1022_v55 = vpop.f32.mrb[12].mxu0 }
  0xff   : > { %759 = vst.msk [vmem:[%s1213_s28 + $0x60] sm:$0xf] %vm734_vm3, %v978_v50  ;;  %746 = vst.msk [vmem:[%s1213_s28 + $0x2c] sm:$0xf] %vm734_vm3, %v965_v51  ;;  %v979_v56 = vpack.c.bf16 %v599_v52, %v599_v52  ;;  %v504_v57 = vadd.f32 %v1022_v55, %v1201_v22  ;;  %v1038_v58 = vpop.f32.mrb[12].mxu1  ;;  %v495_v59 = vpop.f32.mrb[13].mxu0 }
 0x100   : > { %762 = vst.msk [vmem:[%s1213_s28 + $0x6c] sm:$0xf] %vm734_vm3, %v981_v53  ;;  %744 = vst.msk [vmem:[%s1213_s28 + $0x24] sm:$0xf] %vm734_vm3, %v963_v54  ;;  %v568_v60 = vadd.f32 %v1038_v58, %v1201_v22  ;;  %v496_v61 = vadd.f32 %v1201_v22, %v495_v59  ;;  %v559_v62 = vpop.f32.mrb[13].mxu1  ;;  %v1023_v63 = vpop.f32.mrb[14].mxu0 }
 0x101   : > { %760 = vst.msk [vmem:[%s1213_s28 + $0x64] sm:$0xf] %vm734_vm3, %v979_v56  ;;  %v588_v0 = vmax.f32 %v504_v57, 0.0  ;;  %v560_v1 = vadd.f32 %v1201_v22, %v559_v62  ;;  %v507_v2 = vadd.f32 %v1023_v63, %v1201_v22  ;;  %v1039_v3 = vpop.f32.mrb[14].mxu1  ;;  %v498_v4 = vpop.f32.mrb[15].mxu0 }
 0x102   : > { %v604_v5 = vmax.f32 %v568_v60, 0.0  ;;  %v586_v6 = vmax.f32 %v496_v61, 0.0  ;;  %v571_v7 = vadd.f32 %v1039_v3, %v1201_v22  ;;  %v499_v8 = vadd.f32 %v1201_v22, %v498_v4  ;;  %v562_v9 = vpop.f32.mrb[15].mxu1 }
 0x103   : > { %v968_v10 = vpack.c.bf16 %v588_v0, %v588_v0  ;;  %v602_v11 = vmax.f32 %v560_v1, 0.0  ;;  %v589_v12 = vmax.f32 %v507_v2, 0.0  ;;  %v563_v13 = vadd.f32 %v1201_v22, %v562_v9 }
 0x104   : > { %v984_v14 = vpack.c.bf16 %v604_v5, %v604_v5  ;;  %v966_v15 = vpack.c.bf16 %v586_v6, %v586_v6  ;;  %v605_v16 = vmax.f32 %v571_v7, 0.0  ;;  %v587_v17 = vmax.f32 %v499_v8, 0.0 }
 0x105   : > { %749 = vst.msk [vmem:[%s1213_s28 + $0x38] sm:$0xf] %vm734_vm3, %v968_v10  ;;  %v982_v18 = vpack.c.bf16 %v602_v11, %v602_v11  ;;  %v969_v19 = vpack.c.bf16 %v589_v12, %v589_v12  ;;  %v603_v20 = vmax.f32 %v563_v13, 0.0 }
 0x106   : > { %765 = vst.msk [vmem:[%s1213_s28 + $0x78] sm:$0xf] %vm734_vm3, %v984_v14  ;;  %747 = vst.msk [vmem:[%s1213_s28 + $0x30] sm:$0xf] %vm734_vm3, %v966_v15  ;;  %v985_v21 = vpack.c.bf16 %v605_v16, %v605_v16  ;;  %v967_v23 = vpack.c.bf16 %v587_v17, %v587_v17 }
 0x107   : > { %763 = vst.msk [vmem:[%s1213_s28 + $0x70] sm:$0xf] %vm734_vm3, %v982_v18  ;;  %750 = vst.msk [vmem:[%s1213_s28 + $0x3c] sm:$0xf] %vm734_vm3, %v969_v19  ;;  %v983_v22 = vpack.c.bf16 %v603_v20, %v603_v20 }
 0x108   : > { %766 = vst.msk [vmem:[%s1213_s28 + $0x7c] sm:$0xf] %vm734_vm3, %v985_v21  ;;  %748 = vst.msk [vmem:[%s1213_s28 + $0x34] sm:$0xf] %vm734_vm3, %v967_v23 }
 0x109   : > { %764 = vst.msk [vmem:[%s1213_s28 + $0x74] sm:$0xf] %vm734_vm3, %v983_v22 }
 0x10a PF: > { %s13_s14 = sadd.s32 1, %s1109_s14   ;;  %s1319_s12 = smov %s1105_s13 }
 0x10b   : > { %p10_p5 = scmp.ge.s32.totalorder %s13_s14, 4   ;;  %s1320_s13 = smov %s1322_s15 }
 0x10d   :  { %12 = sbr.rel (!%p10_p5) target bundleno = 2 (0x2), region = 68 }

</bundles_post_ra>
